<compile_context>
chip_gen: v7x
topology: tpu7x:2x2x1
jax: 0.10.0
libtpu: 0.0.40
codegen_flags: <defaults>
</compile_context>

<pallas_src>
import math

import jax
import jax.numpy as jnp
from jax.experimental import pallas as pl
from jax.experimental.pallas import tpu as pltpu


def _make_layer_norm_kernel(d_model: int, eps: float):
    inv_nm1 = 1.0 / float(d_model - 1)      # unbiased variance (PyTorch x.var)
    inv_n = 1.0 / float(d_model)

    def _layer_norm_kernel(x_ref, gamma_ref, beta_ref, out_ref):
        # x_ref:     (R, D) f32 tile of rows
        # gamma_ref: (1, D) f32
        # beta_ref:  (1, D) f32
        # out_ref:   (R, D) f32
        x = x_ref[...].astype(jnp.float32)
        mean = jnp.sum(x, axis=-1, keepdims=True) * inv_n          # (R, 1)
        centered = x - mean                                        # (R, D)
        var = jnp.sum(centered * centered, axis=-1, keepdims=True) * inv_nm1
        inv_denom = 1.0 / (var + eps)                              # (R, 1)
        out = gamma_ref[...] * (centered * inv_denom) + beta_ref[...]
        out_ref[...] = out.astype(out_ref.dtype)

    return _layer_norm_kernel


def _pick_block_rows(rows: int) -> int:
    for cand in (512, 256, 128, 64, 32, 16, 8):
        if rows % cand == 0:
            return cand
    return rows  # full extent (always legal as a block dim)


def layer_norm_forward(x, gamma, beta, *, eps=1e-12):
    """x: (..., D) f32; gamma, beta: (D,) f32. Returns same shape/dtype as x."""
    orig_shape = x.shape
    d_model = orig_shape[-1]
    rows = int(math.prod(orig_shape[:-1])) if len(orig_shape) > 1 else 1

    x2 = x.reshape(rows, d_model)
    g2 = gamma.reshape(1, d_model).astype(jnp.float32)
    b2 = beta.reshape(1, d_model).astype(jnp.float32)

    block_rows = _pick_block_rows(rows)
    grid = (rows // block_rows,)

    out2 = pl.pallas_call(
        _make_layer_norm_kernel(d_model, eps),
        out_shape=jax.ShapeDtypeStruct((rows, d_model), jnp.float32),
        grid_spec=pltpu.PrefetchScalarGridSpec(
            num_scalar_prefetch=0,
            grid=grid,
            in_specs=[
                pl.BlockSpec((block_rows, d_model), lambda i: (i, 0)),  # x rows
                pl.BlockSpec((1, d_model), lambda i: (0, 0)),           # gamma
                pl.BlockSpec((1, d_model), lambda i: (0, 0)),           # beta
            ],
            out_specs=pl.BlockSpec((block_rows, d_model), lambda i: (i, 0)),
        ),
        compiler_params=pltpu.CompilerParams(
            dimension_semantics=("parallel",)),
    )(x2, g2, b2)

    return out2.reshape(orig_shape).astype(x.dtype)


if __name__ == "__main__":
    # Small shapes consistent with the module (d_model = 512 in the spec).
    batch, seq, d_model = 2, 16, 512

    key = jax.random.PRNGKey(0)
    k_x, k_g, k_b = jax.random.split(key, 3)

    x = jax.random.normal(k_x, (batch, seq, d_model), dtype=jnp.float32)
    # Module inits gamma=ones, beta=zeros; use perturbed values to actually
    # exercise the scale/shift path.
    gamma = 1.0 + 0.1 * jax.random.normal(k_g, (d_model,), dtype=jnp.float32)
    beta = 0.1 * jax.random.normal(k_b, (d_model,), dtype=jnp.float32)

    out = layer_norm_forward(x, gamma, beta)
    out = jax.block_until_ready(out)

    # Pure-JAX reference matching the PyTorch forward exactly
    # (unbiased variance, division by (var + eps) without sqrt).
    mean = jnp.mean(x, axis=-1, keepdims=True)
    var = jnp.sum((x - mean) ** 2, axis=-1, keepdims=True) / (d_model - 1)
    ref = gamma * ((x - mean) / (var + 1e-12)) + beta

    assert out.shape == (batch, seq, d_model)
    assert out.dtype == jnp.float32
    assert jnp.allclose(out, ref, atol=1e-5, rtol=1e-5), (
        float(jnp.max(jnp.abs(out - ref))))

    print("KERNEL_OK")
</pallas_src>

<mosaic_0001>
module attributes {stable_mosaic.version = 11 : i64} {
  func.func @_layer_norm_kernel(%arg0: i32, %arg1: memref<32x512xf32, #tpu.memory_space<vmem>>, %arg2: memref<1x512xf32, #tpu.memory_space<vmem>>, %arg3: memref<1x512xf32, #tpu.memory_space<vmem>>, %arg4: memref<32x512xf32, #tpu.memory_space<vmem>>) attributes {dimension_semantics = [#tpu.dimension_semantics<parallel>], iteration_bounds = array<i64: 1>, scalar_prefetch = 0 : i64, scratch_operands = 0 : i64, tpu.core_type = #tpu.core_type<tc>, window_params = [{transform_indices = @transform_0, window_bounds = array<i64: 32, 512>}, {pipeline_mode = #tpu.pipeline_mode<synchronous>, transform_indices = @transform_1, window_bounds = array<i64: 1, 512>}, {pipeline_mode = #tpu.pipeline_mode<synchronous>, transform_indices = @transform_2, window_bounds = array<i64: 1, 512>}, {transform_indices = @transform_3, window_bounds = array<i64: 32, 512>}]} {
    %c0 = arith.constant 0 : index
    %c0_0 = arith.constant 0 : index
    %0 = vector.load %arg1[%c0, %c0_0] : memref<32x512xf32, #tpu.memory_space<vmem>>, vector<32x512xf32>
    %cst = arith.constant dense<0.000000e+00> : vector<32xf32>
    %1 = vector.multi_reduction <add>, %0, %cst [1] : vector<32x512xf32> to vector<32xf32>
    %2 = vector.shape_cast %1 : vector<32xf32> to vector<32x1xf32>
    %cst_1 = arith.constant 0.001953125 : f32
    %3 = vector.broadcast %cst_1 : f32 to vector<32x1xf32>
    %4 = arith.mulf %2, %3 : vector<32x1xf32>
    %5 = vector.broadcast %4 : vector<32x1xf32> to vector<32x512xf32>
    %6 = arith.subf %0, %5 : vector<32x512xf32>
    %7 = arith.mulf %6, %6 : vector<32x512xf32>
    %cst_2 = arith.constant dense<0.000000e+00> : vector<32xf32>
    %8 = vector.multi_reduction <add>, %7, %cst_2 [1] : vector<32x512xf32> to vector<32xf32>
    %9 = vector.shape_cast %8 : vector<32xf32> to vector<32x1xf32>
    %cst_3 = arith.constant 0.00195694715 : f32
    %10 = vector.broadcast %cst_3 : f32 to vector<32x1xf32>
    %11 = arith.mulf %9, %10 : vector<32x1xf32>
    %cst_4 = arith.constant 9.99999996E-13 : f32
    %12 = vector.broadcast %cst_4 : f32 to vector<32x1xf32>
    %13 = arith.addf %11, %12 : vector<32x1xf32>
    %cst_5 = arith.constant 1.000000e+00 : f32
    %14 = vector.broadcast %cst_5 : f32 to vector<32x1xf32>
    %15 = arith.divf %14, %13 : vector<32x1xf32>
    %c0_6 = arith.constant 0 : index
    %c0_7 = arith.constant 0 : index
    %16 = vector.load %arg2[%c0_6, %c0_7] : memref<1x512xf32, #tpu.memory_space<vmem>>, vector<1x512xf32>
    %17 = vector.broadcast %15 : vector<32x1xf32> to vector<32x512xf32>
    %18 = arith.mulf %6, %17 : vector<32x512xf32>
    %19 = vector.broadcast %16 : vector<1x512xf32> to vector<32x512xf32>
    %20 = arith.mulf %19, %18 : vector<32x512xf32>
    %c0_8 = arith.constant 0 : index
    %c0_9 = arith.constant 0 : index
    %21 = vector.load %arg3[%c0_8, %c0_9] : memref<1x512xf32, #tpu.memory_space<vmem>>, vector<1x512xf32>
    %22 = vector.broadcast %21 : vector<1x512xf32> to vector<32x512xf32>
    %23 = arith.addf %20, %22 : vector<32x512xf32>
    %c0_10 = arith.constant 0 : index
    %c0_11 = arith.constant 0 : index
    %24 = vector.load %arg4[%c0_10, %c0_11] : memref<32x512xf32, #tpu.memory_space<vmem>>, vector<32x512xf32>
    tpu.vector_store %arg4[%c0_10, %c0_11], %23 {strides = array<i32>} : memref<32x512xf32, #tpu.memory_space<vmem>>, vector<32x512xf32>,
    return
  }
  func.func @transform_0(%arg0: i32) -> (i32, i32) {
    %c0_i32 = arith.constant 0 : i32
    %c0_i32_0 = arith.constant 0 : i32
    return %arg0, %c0_i32 : i32, i32
  }
  func.func @transform_1(%arg0: i32) -> (i32, i32) {
    %c0_i32 = arith.constant 0 : i32
    %c0_i32_0 = arith.constant 0 : i32
    %c0_i32_1 = arith.constant 0 : i32
    return %c0_i32, %c0_i32_0 : i32, i32
  }
  func.func @transform_2(%arg0: i32) -> (i32, i32) {
    %c0_i32 = arith.constant 0 : i32
    %c0_i32_0 = arith.constant 0 : i32
    %c0_i32_1 = arith.constant 0 : i32
    return %c0_i32, %c0_i32_0 : i32, i32
  }
  func.func @transform_3(%arg0: i32) -> (i32, i32) {
    %c0_i32 = arith.constant 0 : i32
    %c0_i32_0 = arith.constant 0 : i32
    return %arg0, %c0_i32 : i32, i32
  }
}

</mosaic_0001>

<bundles_post_ra>
// kernel: tpu_custom_call.1
= control target key start
LH: loop header
LB: loop body
LE: loop exit
PB: predicated region body
PF: predicated region fallthrough
CT: control target
= control target key end

     0   :  { %8 = vsyncpa [#allocation3], 0  ;;  %s558_s0 = inlined_call_operand.hbm [shape: f32[32,512], index: 0, kind: input, shape index: {}]   ;;  %s559_s1 = inlined_call_operand.hbm [shape: f32[1,512], index: 1, kind: input, shape index: {}]   ;;  %s560_s2 = inlined_call_operand.vmem [shape: f32[1,512], index: 2, kind: input, shape index: {}]   ;;  %s561_s3 = inlined_call_operand.hbm [shape: f32[32,512], index: 3, kind: output, shape index: {}]  }
   0x1   :  { %9 = vsyncpa [#allocation6], 0 }
   0x2   :  { %10 = vsyncpa [#allocation4], 0  ;;  %s360_s12 = smov [#allocation2]   ;;  %s288_s16 = scalar_lea.hbm %s558_s0, 2048 }
   0x3   :  { %s16_s13 = sshll.u32 %s360_s12, 4  ;;  %p289_p0 = scmp.ne.s32.totalorder %s558_s0, %s288_s16  ;;  %s17_s13 = int_to_ptr.vmem [resolvable:$true] %s16_s13 }
   0x4   :  { %p292_p1 = scmp.lt.u32.totalorder %s288_s16, %s558_s0 }
   0x6   :  { %p294_p2 = pnand %p292_p1, %p289_p0 }
   0x8   :  { %297 = shalt.err (!%p294_p2)
}
   0x9   :  { %s298_s21 = scalar_lea.vmem %s17_s13, 2048  ;;  %p303_p4 = scmp.lt.s32.totalorder %s17_s13, %s17_s13 }
   0xa   :  { %p299_p3 = scmp.ne.s32.totalorder %s17_s13, %s298_s21  ;;  %p304_p5 = scmp.lt.s32.totalorder %s298_s21, %s298_s21 }
   0xc   :  { %p305_p6 = por %p304_p5, %p303_p4 }
   0xe   :  { %p306_p7 = pnand %p305_p6, %p299_p3 }
  0x10   :  { %309 = shalt.err (!%p306_p7)
}
  0x11   :  { %s361_s22 = smov 512   ;;  %s362_s23 = smov 32  }
  0x12   :  { %22 = dma.hbm_to_vmem [thread:$0]  %s558_s0, 2048, %s17_s13, [#allocation3], %s361_s22, %s361_s22, %s362_s23  }
  0x13   :  { %s363_s26 = smov [#allocation5]   ;;  %s310_s30 = scalar_lea.hbm %s559_s1, 64 }
  0x14   :  { %s29_s27 = sshll.u32 %s363_s26, 4  ;;  %p311_p8 = scmp.ne.s32.totalorder %s559_s1, %s310_s30  ;;  %s30_s27 = int_to_ptr.vmem [resolvable:$true] %s29_s27 }
  0x15   :  { %p314_p9 = scmp.lt.u32.totalorder %s310_s30, %s559_s1 }
  0x17   :  { %p316_p10 = pnand %p314_p9, %p311_p8 }
  0x19   :  { %319 = shalt.err (!%p316_p10)
}
  0x1a   :  { %s320_s8 = scalar_lea.vmem %s30_s27, 64  ;;  %p325_p12 = scmp.lt.s32.totalorder %s30_s27, %s30_s27 }
  0x1b   :  { %p321_p11 = scmp.ne.s32.totalorder %s30_s27, %s320_s8  ;;  %p326_p13 = scmp.lt.s32.totalorder %s320_s8, %s320_s8 }
  0x1d   :  { %p327_p0 = por %p326_p13, %p325_p12 }
  0x1f   :  { %p328_p1 = pnand %p327_p0, %p321_p11 }
  0x21   :  { %331 = shalt.err (!%p328_p1)
}
  0x22   :  { %32 = dma.hbm_to_vmem [thread:$0]  %s559_s1, 64, %s30_s27, [#allocation6]  }
  0x23   :  { %354 = dma.done.wait [#allocation3], 2048  }
  0x24   :  { %355 = vsyncadd [#allocation3], 4294965248 }
  0x25   :  { %356 = dma.done.wait [#allocation6], 64  }
  0x26   :  { %357 = vsyncadd [#allocation6], 4294967232  ;;  %v49_v0 = vld [vmem:[#allocation2 + $0x40] sm:$0xff]  ;;  %v50_v1 = vld [vmem:[#allocation2 + $0x48] sm:$0xff] }
  0x27   :  { %v51_v2 = vld [vmem:[#allocation2 + $0x50] sm:$0xff]  ;;  %v67_v3 = vadd.f32 %v50_v1, %v49_v0  ;;  %v41_v4 = vld [vmem:[#allocation2] sm:$0xff]  ;;  %v42_v5 = vld [vmem:[#allocation2 + $0x8] sm:$0xff] }
  0x28   :  { %v52_v6 = vld [vmem:[#allocation2 + $0x58] sm:$0xff]  ;;  %v43_v7 = vld [vmem:[#allocation2 + $0x10] sm:$0xff]  ;;  %v57_v8 = vadd.f32 %v42_v5, %v41_v4  ;;  %v53_v9 = vld [vmem:[#allocation2 + $0x60] sm:$0xff] }
  0x29   :  { %v68_v10 = vadd.f32 %v67_v3, %v51_v2  ;;  %v44_v11 = vld [vmem:[#allocation2 + $0x18] sm:$0xff]  ;;  %v54_v12 = vld [vmem:[#allocation2 + $0x68] sm:$0xff]  ;;  %v55_v13 = vld [vmem:[#allocation2 + $0x70] sm:$0xff] }
  0x2a   :  { %v58_v14 = vadd.f32 %v57_v8, %v43_v7  ;;  %v72_v15 = vadd.f32 %v54_v12, %v53_v9  ;;  %v45_v16 = vld [vmem:[#allocation2 + $0x20] sm:$0xff]  ;;  %v46_v17 = vld [vmem:[#allocation2 + $0x28] sm:$0xff]  ;;  %v47_v18 = vld [vmem:[#allocation2 + $0x30] sm:$0xff] }
  0x2b   :  { %v69_v19 = vadd.f32 %v68_v10, %v52_v6  ;;  %v56_v20 = vld [vmem:[#allocation2 + $0x78] sm:$0xff]  ;;  %v62_v21 = vadd.f32 %v46_v17, %v45_v16 }
  0x2c   :  { %v59_v22 = vadd.f32 %v58_v14, %v44_v11  ;;  %v73_v23 = vadd.f32 %v72_v15, %v55_v13  ;;  %v48_v24 = vld [vmem:[#allocation2 + $0x38] sm:$0xff] }
  0x2d   :  { %70 = vadd.xlane.f32.xlu1 %v69_v19  ;;  %v63_v25 = vadd.f32 %v62_v21, %v47_v18 }
  0x2e   :  { %60 = vadd.xlane.f32.xlu0 %v59_v22  ;;  %v74_v26 = vadd.f32 %v73_v23, %v56_v20 }
  0x2f   :  { %v64_v27 = vadd.f32 %v63_v25, %v48_v24 }
  0x31   :  { %75 = vadd.xlane.f32.xlu1 %v74_v26 }
  0x32   :  { %65 = vadd.xlane.f32.xlu0 %v64_v27 }
  0xba   :  { %v71_v28 = vpop.xlane.xlu1 %70 }
  0xbb   :  { %v79_v29 = vmul.f32 0.001953125, %v71_v28  ;;  %v61_v30 = vpop.xlane.xlu0 %60 }
  0xbc   :  { %v77_v31 = vmul.f32 0.001953125, %v61_v30  ;;  %v149_v30 = vld [vmem:[#allocation5] sm:$0xf] }
  0xbd   :  { %v412_v32 = vsub.f32 %v49_v0, %v79_v29  ;;  %v414_v33 = vsub.f32 %v50_v1, %v79_v29  ;;  %v416_v34 = vsub.f32 %v51_v2, %v79_v29  ;;  %v424_v39 = vsub.f32 %v52_v6, %v79_v29 }
  0xbe   :  { %v418_v35 = vsub.f32 %v41_v4, %v77_v31  ;;  %v420_v36 = vsub.f32 %v42_v5, %v77_v31  ;;  %v76_v37 = vpop.xlane.xlu1 %75  ;;  %v422_v38 = vsub.f32 %v43_v7, %v77_v31  ;;  %v426_v42 = vsub.f32 %v44_v11, %v77_v31 }
  0xbf   :  { %v80_v40 = vmul.f32 0.001953125, %v76_v37  ;;  %v66_v41 = vpop.xlane.xlu0 %65  ;;  %v105_v43 = vmul.f32 %v412_v32, %v412_v32  ;;  %v106_v44 = vmul.f32 %v414_v33, %v414_v33  ;;  %v107_v51 = vmul.f32 %v416_v34, %v416_v34 }
  0xc0   :  { %v78_v45 = vmul.f32 0.001953125, %v66_v41  ;;  %v97_v46 = vmul.f32 %v418_v35, %v418_v35  ;;  %v98_v47 = vmul.f32 %v420_v36, %v420_v36  ;;  %v99_v50 = vmul.f32 %v422_v38, %v422_v38 }
  0xc1   :  { %v436_v48 = vsub.f32 %v53_v9, %v80_v40  ;;  %v438_v49 = vsub.f32 %v54_v12, %v80_v40  ;;  %v123_v55 = vadd.f32 %v106_v44, %v105_v43  ;;  %v100_v56 = vmul.f32 %v426_v42, %v426_v42  ;;  %v203_v43 = vld [vmem:[%s560_s2] sm:$0xf]  ;;  %s364_s2 = smov [#allocation7]  }
  0xc2   :  { %v444_v52 = vsub.f32 %v45_v16, %v78_v45  ;;  %v446_v53 = vsub.f32 %v46_v17, %v78_v45  ;;  %v113_v54 = vadd.f32 %v98_v47, %v97_v46  ;;  %v108_v57 = vmul.f32 %v424_v39, %v424_v39  ;;  %s262_s11 = sshll.u32 %s364_s2, 4  ;;  %s263_s11 = int_to_ptr.vmem [resolvable:$true] %s262_s11 }
  0xc3   :  { %v452_v58 = vsub.f32 %v47_v18, %v78_v45  ;;  %v454_v59 = vsub.f32 %v55_v13, %v80_v40  ;;  %v456_v61 = vsub.f32 %v48_v24, %v78_v45  ;;  %v124_v0 = vadd.f32 %v123_v55, %v107_v51  ;;  %s332_s12 = scalar_lea.vmem %s263_s11, 2048  ;;  %p337_p3 = scmp.lt.s32.totalorder %s263_s11, %s263_s11 }
  0xc4   :  { %v114_v60 = vadd.f32 %v113_v54, %v99_v50  ;;  %v101_v62 = vmul.f32 %v444_v52, %v444_v52  ;;  %v102_v63 = vmul.f32 %v446_v53, %v446_v53  ;;  %v462_v1 = vsub.f32 %v56_v20, %v80_v40  ;;  %p333_p2 = scmp.ne.s32.totalorder %s263_s11, %s332_s12  ;;  %p338_p4 = scmp.lt.s32.totalorder %s332_s12, %s332_s12 }
  0xc5   :  { %v109_v2 = vmul.f32 %v436_v48, %v436_v48  ;;  %v110_v3 = vmul.f32 %v438_v49, %v438_v49  ;;  %v103_v5 = vmul.f32 %v452_v58, %v452_v58  ;;  %v111_v7 = vmul.f32 %v454_v59, %v454_v59 }
  0xc6   :  { %v115_v4 = vadd.f32 %v114_v60, %v100_v56  ;;  %v118_v6 = vadd.f32 %v102_v63, %v101_v62  ;;  %v104_v9 = vmul.f32 %v456_v61, %v456_v61  ;;  %v125_v11 = vadd.f32 %v124_v0, %v108_v57  ;;  %p339_p5 = por %p338_p4, %p337_p3 }
  0xc7   :  { %v128_v8 = vadd.f32 %v110_v3, %v109_v2  ;;  %v112_v13 = vmul.f32 %v462_v1, %v462_v1  ;;  %v167_v17 = vlaneseq }
  0xc8   :  { %116 = vadd.xlane.f32.xlu0 %v115_v4  ;;  %v119_v10 = vadd.f32 %v118_v6, %v103_v5  ;;  %p340_p6 = pnand %p339_p5, %p333_p2 }
  0xc9   :  { %v129_v14 = vadd.f32 %v128_v8, %v111_v7  ;;  %v168_v22 = vshrl.u32 %v167_v17, 7 }
  0xca   :  { %v120_v12 = vadd.f32 %v119_v10, %v104_v9 }
  0xcb   :  { %v130_v15 = vadd.f32 %v129_v14, %v112_v13  ;;  %v169_v28 = vsub.s32 0, %v168_v22  ;;  %v173_v31 = vsub.s32 1, %v168_v22  ;;  %v177_v37 = vsub.s32 2, %v168_v22 }
  0xcc   :  { %126 = vadd.xlane.f32.xlu0 %v125_v11  ;;  %121 = vadd.xlane.f32.xlu1 %v120_v12  ;;  %v181_v40 = vsub.s32 3, %v168_v22 }
  0xcd   :  { %v479_v44 = vrot.slane %v149_v30, %v169_v28  ;;  %v481_v45 = vrot.slane %v149_v30, %v173_v31  ;;  %v483_v46 = vrot.slane %v149_v30, %v177_v37  ;;  %v487_v51 = vrot.slane %v203_v43, %v169_v28 }
  0xce   :  { %v485_v47 = vrot.slane %v149_v30, %v181_v40  ;;  %v489_v54 = vrot.slane %v203_v43, %v173_v31  ;;  %v491_v55 = vrot.slane %v203_v43, %v177_v37  ;;  %v493_v56 = vrot.slane %v203_v43, %v181_v40 }
  0xd0   :  { %131 = vadd.xlane.f32.xlu1 %v130_v15 }
 0x155   :  { %v117_v16 = vpop.xlane.xlu0 %116 }
 0x156   :  { %v133_v18 = vmul.f32 0.0019569471, %v117_v16 }
 0x158   :  { %v137_v19 = vadd.f32 1e-12, %v133_v18 }
 0x159   :  { %v122_v20 = vpop.xlane.xlu1 %121  ;;  %v127_v21 = vpop.xlane.xlu0 %126 }
 0x15a   :  { %280 = vrcp.f32 %v137_v19  ;;  %v134_v23 = vmul.f32 0.0019569471, %v122_v20  ;;  %v135_v24 = vmul.f32 0.0019569471, %v127_v21 }
 0x15c   :  { %v138_v25 = vadd.f32 1e-12, %v134_v23  ;;  %v139_v26 = vadd.f32 1e-12, %v135_v24 }
 0x15d   :  { %v132_v27 = vpop.xlane.xlu1 %131 }
 0x15e   :  { %282 = vrcp.f32 %v138_v25  ;;  %v136_v29 = vmul.f32 0.0019569471, %v132_v27 }
 0x15f   :  { %284 = vrcp.f32 %v139_v26 }
 0x160   :  { %v140_v41 = vadd.f32 1e-12, %v136_v29 }
 0x162   :  { %286 = vrcp.f32 %v140_v41 }
 0x164   :  { %v281_v50 = vpop.eup %280 }
 0x165   :  { %v150_v57 = vmul.f32 %v281_v50, %v418_v35  ;;  %v151_v60 = vmul.f32 %v281_v50, %v420_v36  ;;  %v152_v62 = vmul.f32 %v281_v50, %v422_v38  ;;  %v153_v63 = vmul.f32 %v281_v50, %v426_v42 }
 0x167   :  { %v187_v0 = vmul.f32 %v479_v44, %v150_v57  ;;  %v188_v2 = vmul.f32 %v481_v45, %v151_v60  ;;  %v189_v3 = vmul.f32 %v483_v46, %v152_v62  ;;  %v190_v4 = vmul.f32 %v485_v47, %v153_v63 }
 0x168   :  { %v283_v5 = vpop.eup %282 }
 0x169   :  { %v285_v6 = vpop.eup %284  ;;  %v225_v7 = vadd.f32 %v487_v51, %v187_v0  ;;  %v226_v35 = vadd.f32 %v489_v54, %v188_v2  ;;  %v227_v36 = vadd.f32 %v491_v55, %v189_v3  ;;  %v228_v38 = vadd.f32 %v493_v56, %v190_v4 }
 0x16a   :  { %v154_v42 = vmul.f32 %v283_v5, %v444_v52  ;;  %v155_v8 = vmul.f32 %v283_v5, %v446_v53  ;;  %v156_v9 = vmul.f32 %v283_v5, %v452_v58  ;;  %v157_v10 = vmul.f32 %v283_v5, %v456_v61 }
 0x16b   :  { %241 = vst [vmem:[#allocation7] sm:$0xff] %v225_v7  ;;  %242 = vst [vmem:[#allocation7 + $0x8] sm:$0xff] %v226_v35  ;;  %v158_v11 = vmul.f32 %v285_v6, %v412_v32  ;;  %v159_v12 = vmul.f32 %v285_v6, %v414_v33  ;;  %v160_v13 = vmul.f32 %v285_v6, %v416_v34 }
 0x16c   :  { %243 = vst [vmem:[#allocation7 + $0x10] sm:$0xff] %v227_v36  ;;  %244 = vst [vmem:[#allocation7 + $0x18] sm:$0xff] %v228_v38  ;;  %v161_v14 = vmul.f32 %v285_v6, %v424_v39  ;;  %v191_v52 = vmul.f32 %v479_v44, %v154_v42  ;;  %v192_v53 = vmul.f32 %v481_v45, %v155_v8  ;;  %v287_v15 = vpop.eup %286 }
 0x16d   :  { %v193_v58 = vmul.f32 %v483_v46, %v156_v9  ;;  %v194_v61 = vmul.f32 %v485_v47, %v157_v10  ;;  %v195_v16 = vmul.f32 %v479_v44, %v158_v11  ;;  %v196_v17 = vmul.f32 %v481_v45, %v159_v12 }
 0x16e   :  { %v197_v32 = vmul.f32 %v483_v46, %v160_v13  ;;  %v198_v33 = vmul.f32 %v485_v47, %v161_v14  ;;  %v229_v34 = vadd.f32 %v487_v51, %v191_v52  ;;  %v230_v39 = vadd.f32 %v489_v54, %v192_v53 }
 0x16f   :  { %v231_v18 = vadd.f32 %v491_v55, %v193_v58  ;;  %v232_v19 = vadd.f32 %v493_v56, %v194_v61  ;;  %v233_v20 = vadd.f32 %v487_v51, %v195_v16  ;;  %v234_v21 = vadd.f32 %v489_v54, %v196_v17 }
 0x170   :  { %v235_v22 = vadd.f32 %v491_v55, %v197_v32  ;;  %v236_v23 = vadd.f32 %v493_v56, %v198_v33  ;;  %245 = vst [vmem:[#allocation7 + $0x20] sm:$0xff] %v229_v34  ;;  %246 = vst [vmem:[#allocation7 + $0x28] sm:$0xff] %v230_v39  ;;  %v162_v24 = vmul.f32 %v287_v15, %v436_v48 }
 0x171   :  { %247 = vst [vmem:[#allocation7 + $0x30] sm:$0xff] %v231_v18  ;;  %248 = vst [vmem:[#allocation7 + $0x38] sm:$0xff] %v232_v19  ;;  %v163_v25 = vmul.f32 %v287_v15, %v438_v49  ;;  %v164_v26 = vmul.f32 %v287_v15, %v454_v59  ;;  %v165_v27 = vmul.f32 %v287_v15, %v462_v1 }
 0x172   :  { %249 = vst [vmem:[#allocation7 + $0x40] sm:$0xff] %v233_v20  ;;  %250 = vst [vmem:[#allocation7 + $0x48] sm:$0xff] %v234_v21  ;;  %v199_v28 = vmul.f32 %v479_v44, %v162_v24 }
 0x173   :  { %251 = vst [vmem:[#allocation7 + $0x50] sm:$0xff] %v235_v22  ;;  %252 = vst [vmem:[#allocation7 + $0x58] sm:$0xff] %v236_v23  ;;  %v200_v29 = vmul.f32 %v481_v45, %v163_v25  ;;  %v201_v30 = vmul.f32 %v483_v46, %v164_v26  ;;  %v202_v48 = vmul.f32 %v485_v47, %v165_v27 }
 0x174   :  { %v237_v49 = vadd.f32 %v487_v51, %v199_v28 }
 0x175   :  { %v238_v59 = vadd.f32 %v489_v54, %v200_v29  ;;  %v239_v1 = vadd.f32 %v491_v55, %v201_v30  ;;  %v240_v31 = vadd.f32 %v493_v56, %v202_v48 }
 0x176   :  { %253 = vst [vmem:[#allocation7 + $0x60] sm:$0xff] %v237_v49 }
 0x177   :  { %254 = vst [vmem:[#allocation7 + $0x68] sm:$0xff] %v238_v59  ;;  %255 = vst [vmem:[#allocation7 + $0x70] sm:$0xff] %v239_v1 }
 0x178   :  { %256 = vst [vmem:[#allocation7 + $0x78] sm:$0xff] %v240_v31 }
 0x179   :  { %343 = shalt.err (!%p340_p6)
}
 0x17a   :  { %s344_s15 = scalar_lea.hbm %s561_s3, 2048 }
 0x17b   :  { %p345_p7 = scmp.ne.s32.totalorder %s561_s3, %s344_s15  ;;  %p348_p8 = scmp.lt.u32.totalorder %s344_s15, %s561_s3 }
 0x17d   :  { %p350_p9 = pnand %p348_p8, %p345_p7 }
 0x17f   :  { %353 = shalt.err (!%p350_p9)
}
 0x180   :  { %268 = dma.vmem_to_hbm [thread:$0]  %s263_s11, 2048, %s561_s3, [#allocation4], %s361_s22, %s361_s22, %s362_s23  }
 0x181   :  { %358 = dma.done.wait [#allocation4], 2048  }
 0x182   :  { %359 = vsyncadd [#allocation4], 4294965248 }
 0x183   :  { %272 = vsyncpa [#allocation3], 1 }
 0x184   :  { %273 = vsyncpa [#allocation6], 1 }
 0x185   :  { %274 = vsyncpa [#allocation4], 1 }

</bundles_post_ra>
